<compile_context>
chip_gen: v5e
topology: v5e:2x2
jax: 0.10.0
libtpu: 0.0.40
codegen_flags: <defaults>
</compile_context>

<pallas_src>
import math
import functools

import jax
import jax.numpy as jnp
from jax.experimental import pallas as pl
from jax.experimental.pallas import tpu as pltpu


_SUBLANE = 8
_LANE = 128
_MAX_PREFETCH_TOKENS = 32768      # cap scalar-prefetch ids per pallas_call (SMEM)


def _round_up(x, m):
    return (x + m - 1) // m * m


def _vmem_budget_bytes():
    """Usable VMEM per TensorCore for this generation (v5e/v6e 128 MiB, v7x 64 MiB)."""
    try:
        cap = int(pltpu.get_tpu_info().vmem_capacity_bytes)
        cap = max(32 << 20, min(cap, 128 << 20))
    except Exception:
        cap = 64 << 20            # conservative default (v7x-safe)
    return int(cap * 0.75)


def _onehot_vocab_cutoff():
    """One-hot MXU gather only pays off for small vocabs; lower cutoff on v5e."""
    try:
        kind = jax.devices()[0].device_kind.lower()
    except Exception:
        kind = ""
    if ("v5 lite" in kind) or ("v5e" in kind) or ("v5lite" in kind):
        return 512
    return 1024


# --------------------------------------------------------------------------
# Fast path (small vocab): LUT resident in VMEM, T tokens per grid step,
# MXU one-hot gather.
# --------------------------------------------------------------------------
def _embed_onehot_kernel(ids_ref, lut_ref, out_ref, *, scale, vocab):
    # ids_ref: (T, 1)           int32 token ids of this block (VMEM)
    # lut_ref: (vocab, d_model) full embedding table, resident in VMEM
    # out_ref: (T, d_model)     output block (T is a multiple of 8 sublanes)
    T = out_ref.shape[0]
    ids = ids_ref[...]                                            # (T, 1)
    vocab_iota = jax.lax.broadcasted_iota(jnp.int32, (T, vocab), 1)
    onehot = (vocab_iota == ids).astype(lut_ref.dtype)            # (T, vocab)
    # Gather = one-hot x LUT on the MXU.  HIGHEST precision keeps f32 rows
    # bit-exact (multiply-by-1.0 plus exact zero terms).
    gathered = jnp.dot(
        onehot,
        lut_ref[...],
        preferred_element_type=jnp.float32,
        precision=jax.lax.Precision.HIGHEST,
    )
    out_ref[...] = (gathered * scale).astype(out_ref.dtype)


def _embeddings_resident(flat_ids, lut, scale, T, vmem_budget):
    n, = flat_ids.shape
    vocab, d_model = lut.shape

    n_pad = _round_up(n, T)
    ids_padded = jnp.pad(flat_ids, (0, n_pad - n)).reshape(n_pad, 1)

    kernel = functools.partial(_embed_onehot_kernel, scale=scale, vocab=vocab)

    out = pl.pallas_call(
        kernel,
        out_shape=jax.ShapeDtypeStruct((n_pad, d_model), lut.dtype),
        grid_spec=pltpu.PrefetchScalarGridSpec(
            num_scalar_prefetch=0,
            grid=(n_pad // T,),
            in_specs=[
                # token ids for this block
                pl.BlockSpec((T, 1), lambda i: (i, 0)),
                # full LUT; constant block index -> fetched into VMEM once.
                # TODO(synk): pipeline_mode=pl.Buffered(1) would halve the
                # resident LUT footprint; the budget below counts it 2x instead.
                pl.BlockSpec((vocab, d_model), lambda i: (0, 0)),
            ],
            out_specs=pl.BlockSpec((T, d_model), lambda i: (i, 0)),
        ),
        compiler_params=pltpu.CompilerParams(
            # disjoint output blocks -> shard the token-block grid over both
            # TensorCores on v7x.
            # TODO(synk): optionally add a second "parallel" axis over d_model
            # halves so each v7x core only holds half the LUT columns.
            dimension_semantics=("parallel",),
            vmem_limit_bytes=vmem_budget,
        ),
    )(ids_padded, lut)
    return out[:n]


# --------------------------------------------------------------------------
# Large-vocab path: scalar-prefetched ids + batched row DMAs from the HBM LUT
# into a (T, d_model) VMEM scratch, one dense (T, d_model) store per step.
# --------------------------------------------------------------------------
def _embed_dma_kernel(ids_ref, lut_hbm, out_ref, rows, sem, *, scale, T):
    # ids_ref : SMEM (n_pad,)        int32 token ids (scalar-prefetched)
    # lut_hbm : HBM  (vocab, d_model) embedding table (memory_space=pl.ANY)
    # out_ref : VMEM (T, d_model)     output block (auto-pipelined writeback)
    # rows    : VMEM (T, d_model)     gathered rows for this block
    # sem     : single DMA semaphore shared by the T equal-size row copies
    base = pl.multiple_of(pl.program_id(0) * T, T)

    # Start all T row copies; they run concurrently on the DMA engine.
    @pl.loop(0, T)
    def _start(t):
        tok = ids_ref[base + t]
        pltpu.make_async_copy(
            lut_hbm.at[pl.ds(tok, 1), :], rows.at[pl.ds(t, 1), :], sem
        ).start()

    # Wait for all of them (same semaphore, equal sizes: one wait per copy).
    @pl.loop(0, T)
    def _wait(t):
        pltpu.make_async_copy(
            lut_hbm.at[pl.ds(0, 1), :], rows.at[pl.ds(0, 1), :], sem
        ).wait()

    out_ref[...] = (rows[...] * scale).astype(out_ref.dtype)


def _embeddings_dma_gather(flat_ids, lut, scale, T, vmem_budget):
    n, = flat_ids.shape
    vocab, d_model = lut.shape
    n_pad = _round_up(n, T)
    ids_padded = jnp.pad(flat_ids, (0, n_pad - n))   # pad with token 0 (valid row)

    kernel = functools.partial(_embed_dma_kernel, scale=scale, T=T)

    out = pl.pallas_call(
        kernel,
        out_shape=jax.ShapeDtypeStruct((n_pad, d_model), lut.dtype),
        grid_spec=pltpu.PrefetchScalarGridSpec(
            num_scalar_prefetch=1,                     # ids land in SMEM
            grid=(n_pad // T,),
            in_specs=[pl.BlockSpec(memory_space=pl.ANY)],   # LUT stays in HBM
            out_specs=pl.BlockSpec((T, d_model), lambda i, ids: (i, 0)),
            scratch_shapes=[
                pltpu.VMEM((T, d_model), lut.dtype),
                pltpu.SemaphoreType.DMA,
            ],
        ),
        compiler_params=pltpu.CompilerParams(
            # disjoint output blocks, no cross-step state -> v7x TCs split grid
            dimension_semantics=("parallel",),
            vmem_limit_bytes=vmem_budget,
        ),
    )(ids_padded, lut)
    return out[:n]


# --------------------------------------------------------------------------
# Public wrapper
# --------------------------------------------------------------------------
def embeddings_forward(ids, lut):
    """Pallas equivalent of Embeddings.forward.

    ids: (B, S) int32
    lut: (vocab, d_model) float32
    returns: (B, S, d_model) float32 = lut[ids] * sqrt(d_model)
    """
    B, S = ids.shape
    vocab, d_model = lut.shape
    n = B * S
    scale = math.sqrt(d_model)

    # PyTorch raises on out-of-range ids; here we clamp so invalid ids can
    # never produce out-of-bounds block indices / DMAs.
    flat_ids = jnp.clip(ids.reshape(n).astype(jnp.int32), 0, vocab - 1)

    vmem_budget = _vmem_budget_bytes()
    itemsize = lut.dtype.itemsize

    # ---- resident one-hot fast-path gate (conservative VMEM accounting) ----
    T_res_max = 1024 if vmem_budget >= (72 << 20) else 512
    T_res = min(T_res_max, _round_up(n, _SUBLANE))
    resident_bytes = (
        2 * vocab * d_model * itemsize        # LUT, double-buffered by default
        + 2 * T_res * d_model * itemsize      # output blocks, double-buffered
        + 2 * T_res * _LANE * 4               # ids blocks (lane padded)
        + T_res * max(vocab, _LANE) * 4       # in-kernel one-hot intermediate
    )
    use_resident = (vocab <= _onehot_vocab_cutoff()
                    and resident_bytes < int(0.7 * vmem_budget))

    if use_resident:
        out_flat = _embeddings_resident(flat_ids, lut, scale, T_res, vmem_budget)
    else:
        # Batched row-DMA gather.  Chunk the token dimension so the
        # scalar-prefetched ids stay small in SMEM.
        T_dma = min(256, _round_up(n, _SUBLANE))
        pieces = []
        for start in range(0, n, _MAX_PREFETCH_TOKENS):
            stop = min(start + _MAX_PREFETCH_TOKENS, n)
            pieces.append(
                _embeddings_dma_gather(flat_ids[start:stop], lut, scale,
                                       T_dma, vmem_budget))
        out_flat = pieces[0] if len(pieces) == 1 else jnp.concatenate(pieces, 0)

    return out_flat.reshape(B, S, d_model)


if __name__ == "__main__":
    # Small deterministic setup consistent with the module:
    #   vocab = 50, d_model = 32, batch = 2, seq = 8
    vocab, d_model = 50, 32
    B, S = 2, 8

    key = jax.random.PRNGKey(0)
    k_lut, k_ids = jax.random.split(key)

    # nn.Embedding default init: weight ~ N(0, 1)
    lut = jax.random.normal(k_lut, (vocab, d_model), dtype=jnp.float32)
    ids = jax.random.randint(k_ids, (B, S), 0, vocab, dtype=jnp.int32)

    scale = math.sqrt(d_model)
    ref = jnp.take(lut, ids, axis=0) * scale

    # 1) Public wrapper (routes to the resident one-hot fast path here).
    out = embeddings_forward(ids, lut)
    out = jax.block_until_ready(out)
    assert out.shape == (B, S, d_model)
    assert jnp.allclose(out, ref, atol=1e-5, rtol=1e-5), \
        float(jnp.max(jnp.abs(out - ref)))

    # 2) Also exercise the large-vocab batched row-DMA gather path directly
    #    (T=8 -> two grid steps) and check it against the same reference.
    flat = jnp.clip(ids.reshape(-1).astype(jnp.int32), 0, vocab - 1)
    out_dma = _embeddings_dma_gather(flat, lut, scale, 8, _vmem_budget_bytes())
    out_dma = jax.block_until_ready(out_dma)
    assert jnp.allclose(out_dma.reshape(B, S, d_model), ref,
                        atol=1e-5, rtol=1e-5), \
        float(jnp.max(jnp.abs(out_dma.reshape(B, S, d_model) - ref)))

    print("KERNEL_OK")
</pallas_src>

<mosaic_0001>
module attributes {stable_mosaic.version = 11 : i64} {
  func.func @_embed_onehot_kernel(%arg0: i32, %arg1: memref<16x1xi32, #tpu.memory_space<vmem>>, %arg2: memref<50x32xf32, #tpu.memory_space<vmem>>, %arg3: memref<16x32xf32, #tpu.memory_space<vmem>>) attributes {dimension_semantics = [#tpu.dimension_semantics<parallel>], iteration_bounds = array<i64: 1>, scalar_prefetch = 0 : i64, scratch_operands = 0 : i64, tpu.core_type = #tpu.core_type<tc>, window_params = [{transform_indices = @transform_0, window_bounds = array<i64: 16, 1>}, {pipeline_mode = #tpu.pipeline_mode<synchronous>, transform_indices = @transform_1, window_bounds = array<i64: 50, 32>}, {transform_indices = @transform_2, window_bounds = array<i64: 16, 32>}]} {
    %c0 = arith.constant 0 : index
    %c0_0 = arith.constant 0 : index
    %0 = vector.load %arg1[%c0, %c0_0] : memref<16x1xi32, #tpu.memory_space<vmem>>, vector<16x1xi32>
    %1 = tpu.iota {dimensions = array<i32: 1>} : vector<16x50xi32>
    %2 = vector.broadcast %0 : vector<16x1xi32> to vector<16x50xi32>
    %3 = arith.cmpi eq, %1, %2 : vector<16x50xi32>
    %4 = arith.extui %3 : vector<16x50xi1> to vector<16x50xi32>
    %5 = arith.sitofp %4 : vector<16x50xi32> to vector<16x50xf32>
    %c0_1 = arith.constant 0 : index
    %c0_2 = arith.constant 0 : index
    %6 = vector.load %arg2[%c0_1, %c0_2] : memref<50x32xf32, #tpu.memory_space<vmem>>, vector<50x32xf32>
    %cst = arith.constant dense<0.000000e+00> : vector<16x32xf32>
    %7 = tpu.matmul %5, %6, %cst {dimension_numbers = #tpu.dot_dimension_numbers<[1], [0], [0], [1], [0, 0, 1, 1], [], []>, precision = #tpu.contract_precision<fp32>} : vector<16x50xf32>, vector<50x32xf32>, vector<16x32xf32> -> vector<16x32xf32>
    %cst_3 = arith.constant 5.65685415 : f32
    %8 = vector.broadcast %cst_3 : f32 to vector<16x32xf32>
    %9 = arith.mulf %7, %8 : vector<16x32xf32>
    %c0_4 = arith.constant 0 : index
    %c0_5 = arith.constant 0 : index
    %10 = vector.load %arg3[%c0_4, %c0_5] : memref<16x32xf32, #tpu.memory_space<vmem>>, vector<16x32xf32>
    tpu.vector_store %arg3[%c0_4, %c0_5], %9 {strides = array<i32>} : memref<16x32xf32, #tpu.memory_space<vmem>>, vector<16x32xf32>,
    return
  }
  func.func @transform_0(%arg0: i32) -> (i32, i32) {
    %c0_i32 = arith.constant 0 : i32
    %c0_i32_0 = arith.constant 0 : i32
    return %arg0, %c0_i32 : i32, i32
  }
  func.func @transform_1(%arg0: i32) -> (i32, i32) {
    %c0_i32 = arith.constant 0 : i32
    %c0_i32_0 = arith.constant 0 : i32
    %c0_i32_1 = arith.constant 0 : i32
    return %c0_i32, %c0_i32_0 : i32, i32
  }
  func.func @transform_2(%arg0: i32) -> (i32, i32) {
    %c0_i32 = arith.constant 0 : i32
    %c0_i32_0 = arith.constant 0 : i32
    return %arg0, %c0_i32 : i32, i32
  }
}

</mosaic_0001>

<bundles_post_ra>
// kernel: tpu_custom_call.1
= control target key start
LH: loop header
LB: loop body
LE: loop exit
PB: predicated region body
PF: predicated region fallthrough
CT: control target
= control target key end

     0   :  { %vm42_vm0 = vcmask 1041408   ;;  %v378_v2 = vmov 0   ;;  %s478_s0 = inlined_call_operand.vmem [shape: s32[16,1], index: 0, kind: input, shape index: {}]   ;;  %s479_s1 = inlined_call_operand.vmem [shape: f32[50,32], index: 1, kind: input, shape index: {}]   ;;  %s480_s2 = inlined_call_operand.hbm [shape: f32[16,32], index: 2, kind: output, shape index: {}]  }
   0x1   :  { %v12_v0 = vld [vmem:[%s478_s0] sm:$0xff]  ;;  %v34_v1 = vld [vmem:[%s479_s1 + $0x30] sm:$0x3]  ;;  %351 = vset.pattern.permute.xlu0 %v378_v2  ;;  %v33_v4 = vld [vmem:[%s479_s1 + $0x28] sm:$0xff] }
   0x2   :  { %v44_v3 = vsel %vm42_vm0, %v34_v1, 0  ;;  %v32_v5 = vld [vmem:[%s479_s1 + $0x20] sm:$0xff]  ;;  %v31_v6 = vld [vmem:[%s479_s1 + $0x18] sm:$0xff]  ;;  %17 = vperm.xlu0 %351, %v12_v0   ;;  %v415_v8 = vand.u32 4294901760, %v33_v4  ;;  %v30_v11 = vld [vmem:[%s479_s1 + $0x10] sm:$0xff] }
   0x3   :  { %v413_v7 = vand.u32 4294901760, %v44_v3  ;;  %v417_v9 = vand.u32 4294901760, %v32_v5  ;;  %v419_v10 = vand.u32 4294901760, %v31_v6  ;;  %v29_v12 = vld [vmem:[%s479_s1 + $0x8] sm:$0xff]  ;;  %v427_v13 = vand.u32 4294901760, %v30_v11 }
   0x4   :  { %v429_v14 = vand.u32 4294901760, %v29_v12 }
   0x5   :  { %7 = vsyncpa [#allocation3], 0  ;;  %v96_v15 = vsub.f32 %v44_v3, %v413_v7  ;;  %v102_v16 = vsub.f32 %v33_v4, %v415_v8  ;;  %v108_v17 = vsub.f32 %v32_v5, %v417_v9  ;;  %197 = vmatpush.msra.mxu3 %v413_v7  ;;  %v114_v18 = vsub.f32 %v31_v6, %v419_v10  ;;  %v13_v25 = vld [vmem:[%s478_s0 + $0x8] sm:$0xff]  ;;  %v28_v40 = vld [vmem:[%s479_s1] sm:$0xff]  ;;  %s380_s1 = smov [#allocation2]   ;;  %s312_s29 = sshll.u32 %s480_s2, 4  ;;  %s313_s29 = int_to_ptr.hbm [resolvable:$true] %s312_s29 }
   0x6   :  { %v120_v19 = vsub.f32 %v30_v11, %v427_v13  ;;  %56 = vmatpush.msra.mxu0 %v413_v7  ;;  %v126_v20 = vsub.f32 %v29_v12, %v429_v14  ;;  %v67_v41 = vand.u32 4294901760, %v28_v40  ;;  %v14_v46 = vlaneseq  ;;  %s310_s26 = sshll.u32 %s380_s1, 4  ;;  %s381_s30 = smov 128   ;;  %s311_s26 = int_to_ptr.vmem [resolvable:$true] %s310_s26 }
   0x7   :  { %v97_v21 = vand.u32 4294901760, %v96_v15  ;;  %v103_v22 = vand.u32 4294901760, %v102_v16  ;;  %157 = vmatpush.msra.mxu2 %v96_v15  ;;  %v109_v23 = vand.u32 4294901760, %v108_v17  ;;  %v115_v24 = vand.u32 4294901760, %v114_v18  ;;  %199 = vmatpush.msra.mxu3 %v415_v8  ;;  %s382_s3 = smov 8  }
   0x8   :  { %58 = vmatpush.msra.mxu0 %v415_v8  ;;  %v121_v29 = vand.u32 4294901760, %v120_v19  ;;  %v127_v33 = vand.u32 4294901760, %v126_v20  ;;  %v132_v42 = vsub.f32 %v28_v40, %v67_v41  ;;  %v15_v47 = vand.u32 127, %v14_v46 }
   0x9   :  { %v98_v26 = vsub.f32 %v96_v15, %v97_v21  ;;  %v104_v27 = vsub.f32 %v102_v16, %v103_v22  ;;  %v110_v28 = vsub.f32 %v108_v17, %v109_v23  ;;  %160 = vmatpush.msra.mxu2 %v102_v16  ;;  %201 = vmatpush.msra.mxu3 %v417_v9  ;;  %vm35_vm1 = vcmask 408576  }
   0xa   :  { %60 = vmatpush.msra.mxu0 %v417_v9  ;;  %20 = vperm.xlu0 %351, %v13_v25   ;;  %v116_v32 = vsub.f32 %v114_v18, %v115_v24  ;;  %v122_v35 = vsub.f32 %v120_v19, %v121_v29  ;;  %v128_v37 = vsub.f32 %v126_v20, %v127_v33  ;;  %v133_v43 = vand.u32 4294901760, %v132_v42 }
   0xb   :  { %v99_v30 = vand.u32 4294901760, %v98_v26  ;;  %v105_v31 = vand.u32 4294901760, %v104_v27  ;;  %163 = vmatpush.msra.mxu2 %v108_v17  ;;  %203 = vmatpush.msra.mxu3 %v419_v10  ;;  %v111_v34 = vand.u32 4294901760, %v110_v28  ;;  %v379_v49 = vmov 0.0  }
   0xc   :  { %62 = vmatpush.msra.mxu0 %v419_v10  ;;  %v117_v36 = vand.u32 4294901760, %v116_v32  ;;  %v123_v38 = vand.u32 4294901760, %v122_v35  ;;  %v129_v39 = vand.u32 4294901760, %v128_v37  ;;  %v134_v44 = vsub.f32 %v132_v42, %v133_v43 }
   0xd   :  { %100 = vmatpush.msra.mxu1 %v99_v30  ;;  %166 = vmatpush.msra.mxu2 %v114_v18  ;;  %vm303_vm4 = vcmask 261120  }
   0xe   :  { %205 = vmatpush.msra.mxu3 %v427_v13  ;;  %64 = vmatpush.msra.mxu0 %v427_v13  ;;  %v135_v45 = vand.u32 4294901760, %v134_v44 }
   0xf   :  { %106 = vmatpush.msra.mxu1 %v105_v31  ;;  %169 = vmatpush.msra.mxu2 %v120_v19 }
  0x10   :  { %207 = vmatpush.msra.mxu3 %v429_v14  ;;  %66 = vmatpush.msra.mxu0 %v429_v14 }
  0x11   :  { %112 = vmatpush.msra.mxu1 %v111_v34  ;;  %172 = vmatpush.msra.mxu2 %v126_v20 }
  0x12   :  { %209 = vmatpush.msra.mxu3 %v67_v41  ;;  %68 = vmatpush.msra.mxu0 %v67_v41 }
  0x13   :  { %118 = vmatpush.msra.mxu1 %v117_v36  ;;  %175 = vmatpush.msra.mxu2 %v132_v42 }
  0x14   :  { %339 = vmatpush.msrb.mxu3 %v413_v7  ;;  %235 = vmatpush.msrb.mxu0 %v97_v21 }
  0x15   :  { %124 = vmatpush.msra.mxu1 %v123_v38  ;;  %332 = vmatpush.msrb.mxu2 %v97_v21 }
  0x16   :  { %340 = vmatpush.msrb.mxu3 %v415_v8  ;;  %239 = vmatpush.msrb.mxu0 %v103_v22 }
  0x17   :  { %130 = vmatpush.msra.mxu1 %v129_v39  ;;  %333 = vmatpush.msrb.mxu2 %v103_v22 }
  0x18   :  { %341 = vmatpush.msrb.mxu3 %v417_v9  ;;  %243 = vmatpush.msrb.mxu0 %v109_v23 }
  0x19   :  { %334 = vmatpush.msrb.mxu2 %v109_v23  ;;  %136 = vmatpush.msra.mxu1 %v135_v45 }
  0x1a   :  { %342 = vmatpush.msrb.mxu3 %v419_v10  ;;  %247 = vmatpush.msrb.mxu0 %v115_v24 }
  0x1b   :  { %279 = vmatpush.msrb.mxu1 %v413_v7  ;;  %335 = vmatpush.msrb.mxu2 %v115_v24 }
  0x1c   :  { %343 = vmatpush.msrb.mxu3 %v427_v13  ;;  %251 = vmatpush.msrb.mxu0 %v121_v29 }
  0x1d   :  { %281 = vmatpush.msrb.mxu1 %v415_v8  ;;  %336 = vmatpush.msrb.mxu2 %v121_v29 }
  0x1e   :  { %344 = vmatpush.msrb.mxu3 %v429_v14  ;;  %255 = vmatpush.msrb.mxu0 %v127_v33 }
  0x1f   :  { %283 = vmatpush.msrb.mxu1 %v417_v9  ;;  %337 = vmatpush.msrb.mxu2 %v127_v33 }
  0x20   :  { %345 = vmatpush.msrb.mxu3 %v67_v41  ;;  %259 = vmatpush.msrb.mxu0 %v133_v43 }
  0x21   :  { %285 = vmatpush.msrb.mxu1 %v419_v10  ;;  %338 = vmatpush.msrb.mxu2 %v133_v43 }
  0x23   :  { %287 = vmatpush.msrb.mxu1 %v427_v13 }
  0x25   :  { %289 = vmatpush.msrb.mxu1 %v429_v14 }
  0x27   :  { %291 = vmatpush.msrb.mxu1 %v67_v41 }
  0x74   :  { %v18_v48 = vpop.permute.xlu0 %17 }
  0x75   :  { %vm22_vm2 = vcmp.eq.s32.totalorder %v15_v47, %v18_v48 }
  0x76   :  { %v324_v50 = vsel %vm22_vm2, 1.0, %v379_v49 }
  0x77   :  { %326 = vmatmul.msk.f32.vlgmr.msra.gmra.mxu1 %vm35_vm1, %v324_v50  ;;  %v37_v51 = vsel %vm35_vm1, %v324_v50, 0 }
  0x78   :  { %v70_v52 = vsub.f32 %v37_v51, %v37_v51 }
  0x7a   :  { %178 = vmatmul.f32.vlgmr.msra.gmra.mxu2 %v70_v52  ;;  %v71_v53 = vand.u32 4294901760, %v70_v52 }
  0x7c   :  { %213 = vmatmul.f32.vlgmr.msra.gmra.mxu3 %v71_v53  ;;  %v21_v54 = vpop.permute.xlu0 %20  ;;  %v72_v55 = vsub.f32 %v70_v52, %v71_v53 }
  0x7d   :  { %vm23_vm3 = vcmp.eq.s32.totalorder %v15_v47, %v21_v54 }
  0x7e   :  { %v325_v56 = vsel %vm23_vm3, 1.0, %v379_v49  ;;  %v73_v57 = vand.u32 4294901760, %v72_v55 }
  0x7f   :  { %327 = vmatmul.msk.f32.gmra.mxu1 %vm35_vm1, %v325_v56  ;;  %v40_v58 = vsel %vm35_vm1, %v325_v56, 0 }
  0x80   :  { %74 = vmatmul.f32.vlgmr.msra.gmra.mxu0 %v73_v57  ;;  %v78_v59 = vsub.f32 %v40_v58, %v40_v58 }
  0x82   :  { %183 = vmatmul.f32.gmra.mxu2 %v78_v59  ;;  %v79_v60 = vand.u32 4294901760, %v78_v59 }
  0x84   :  { %219 = vmatmul.f32.gmra.mxu3 %v79_v60  ;;  %v80_v61 = vsub.f32 %v78_v59, %v79_v60 }
  0x86   :  { %v81_v62 = vand.u32 4294901760, %v80_v61 }
  0x87   :  { %330 = vmatmul.msk.f32.vlgmr.msrb.gmra.mxu1 %vm35_vm1, %v324_v50 }
  0x88   :  { %82 = vmatmul.f32.gmra.mxu0 %v81_v62 }
  0x8a   :  { %329 = vmatmul.msk.f32.vlgmr.msrb.gmra.mxu2 %vm35_vm1, %v325_v56 }
  0x8c   :  { %331 = vmatmul.msk.f32.vlgmr.msrb.gmra.mxu3 %vm35_vm1, %v325_v56 }
  0x90   :  { %328 = vmatmul.msk.f32.vlgmr.msrb.gmra.mxu0 %vm35_vm1, %v324_v50 }
  0xf4   :  { %v139_v63 = vpop.f32.mrf.mxu1 }
  0xfc   :  { %v143_v3 = vpop.f32.mrf.mxu1 }
  0xfd   :  { %v75_v0 = vpop.f32.mrf.mxu0  ;;  %v179_v1 = vpop.f32.mrf.mxu2 }
  0xfe   :  { %v140_v4 = vadd.f32 %v139_v63, %v75_v0 }
  0xff   :  { %v214_v2 = vpop.f32.mrf.mxu3 }
 0x100   :  { %v180_v9 = vadd.f32 %v179_v1, %v140_v4 }
 0x102   :  { %v215_v11 = vadd.f32 %v214_v2, %v180_v9 }
 0x104   :  { %v294_v17 = vpop.f32.mrf.mxu1 }
 0x105   :  { %v83_v5 = vpop.f32.mrf.mxu0  ;;  %v184_v6 = vpop.f32.mrf.mxu2 }
 0x106   :  { %v144_v7 = vadd.f32 %v143_v3, %v83_v5 }
 0x107   :  { %v220_v8 = vpop.f32.mrf.mxu3 }
 0x108   :  { %v185_v10 = vadd.f32 %v184_v6, %v144_v7 }
 0x10a   :  { %v221_v12 = vadd.f32 %v220_v8, %v185_v10 }
 0x10d   :  { %v262_v13 = vpop.f32.mrf.mxu0  ;;  %v266_v14 = vpop.f32.mrf.mxu2 }
 0x10e   :  { %v263_v15 = vadd.f32 %v262_v13, %v215_v11  ;;  %v267_v16 = vadd.f32 %v266_v14, %v221_v12 }
 0x10f   :  { %v298_v18 = vpop.f32.mrf.mxu3 }
 0x110   :  { %v295_v19 = vadd.f32 %v294_v17, %v263_v15  ;;  %v299_v20 = vadd.f32 %v298_v18, %v267_v16 }
 0x112   :  { %v301_v21 = vmul.f32 5.656854, %v295_v19  ;;  %v302_v22 = vmul.f32 5.656854, %v299_v20 }
 0x114   :  { %304 = vst.msk [vmem:[#allocation2] sm:$0xff] %vm303_vm4, %v301_v21 }
 0x115   :  { %305 = vst.msk [vmem:[#allocation2 + $0x8] sm:$0xff] %vm303_vm4, %v302_v22 }
 0x116   :  { %318 = dma.vmem_to_hbm [thread:$0]  %s311_s26, 256, %s313_s29, [#allocation3], %s381_s30, %s381_s30, %s382_s3  }
 0x117   :  { %376 = dma.done.wait [#allocation3], 256  }
 0x118   :  { %377 = vsyncadd [#allocation3], 4294967040 }
 0x119   :  { %323 = vsyncpa [#allocation3], 1 }

</bundles_post_ra>
